<compile_context>
chip_gen: v5e
topology: v5e:2x2
jax: 0.10.0
libtpu: 0.0.40
codegen_flags: <defaults>
</compile_context>

<pallas_src>
import jax
import jax.numpy as jnp
from jax.experimental import pallas as pl
from jax.experimental.pallas import tpu as pltpu

# ---- static layout of the packed parameter slab (rows of a (32, 128) array) ----
_BP, _LP = 8, 128          # padded batch (sublanes), padded feature dim (lanes)
_SLAB_ROWS = 32
_W1_R, _W2_R, _W3_R = 0, 8, 16      # weight row blocks (row k of layer i = W_i[k, :])
_B1_R, _B2_R, _B3_R = 24, 25, 26    # bias rows
_D_IN, _D_H1, _D_H2, _D_OUT = 5, 8, 4, 12


def _mlp_kernel(x_ref, p_ref, o_ref):
    """x_ref: (8, 128) padded input; p_ref: (32, 128) packed params; o_ref: (8, 128)."""
    x = x_ref[...]          # 1 vreg
    p = p_ref[...]          # 4 vregs (whole packed parameter slab)

    def layer(h, w_row0, b_row, k_dim):
        # Accumulator starts as the (lane-padded) bias broadcast over the batch.
        acc = jnp.broadcast_to(p[b_row:b_row + 1, :], h.shape)
        # VPU broadcast-MAC over the tiny contraction dim (unrolled, K <= 8).
        for k in range(k_dim):
            acc = acc + h[:, k:k + 1] * p[w_row0 + k:w_row0 + k + 1, :]
        return jnp.maximum(acc, 0.0)

    h = layer(x, _W1_R, _B1_R, _D_IN)    # (8, 128); real data in lanes [0, 8)
    h = layer(h, _W2_R, _B2_R, _D_H1)    # real data in lanes [0, 4)
    h = layer(h, _W3_R, _B3_R, _D_H2)    # real data in lanes [0, 12)
    o_ref[...] = h.astype(o_ref.dtype)


def pack_params(params):
    """Pack (in,out)-layout weights and (1,out) biases into one (32,128) f32 slab.

    Zero padding is load-bearing: padded lanes of every activation stay exactly 0
    through all three layers, so the padded compute is numerically inert.
    """
    slab = jnp.zeros((_SLAB_ROWS, _LP), jnp.float32)
    slab = slab.at[_W1_R:_W1_R + _D_IN, :_D_H1].set(params["w1"])   # (5, 8)
    slab = slab.at[_W2_R:_W2_R + _D_H1, :_D_H2].set(params["w2"])   # (8, 4)
    slab = slab.at[_W3_R:_W3_R + _D_H2, :_D_OUT].set(params["w3"])  # (4, 12)
    slab = slab.at[_B1_R, :_D_H1].set(params["b1"].reshape(-1))
    slab = slab.at[_B2_R, :_D_H2].set(params["b2"].reshape(-1))
    slab = slab.at[_B3_R, :_D_OUT].set(params["b3"].reshape(-1))
    return slab


def simple_model_forward(x, param_slab):
    """x: (B, 5) float32 with B <= 8.  param_slab: (32, 128) from pack_params()."""
    B = x.shape[0]
    x_pad = jnp.zeros((_BP, _LP), jnp.float32).at[:B, :_D_IN].set(x)

    full = lambda shape: pl.BlockSpec(shape, lambda: (0, 0),
                                      memory_space=pltpu.MemorySpace.VMEM)
    out_pad = pl.pallas_call(
        _mlp_kernel,
        out_shape=jax.ShapeDtypeStruct((_BP, _LP), jnp.float32),
        grid=(),
        in_specs=[full((_BP, _LP)), full((_SLAB_ROWS, _LP))],
        out_specs=full((_BP, _LP)),
        cost_estimate=pl.CostEstimate(
            flops=2 * _BP * (_D_IN * _D_H1 + _D_H1 * _D_H2 + _D_H2 * _D_OUT),
            transcendentals=0,
            bytes_accessed=4 * (_BP * _LP + _SLAB_ROWS * _LP + _BP * _LP)),
    )(x_pad, param_slab)
    return out_pad[:B, :_D_OUT]


def init_params(key):
    """nn.Linear-style init (uniform +/- 1/sqrt(fan_in)); weights as (in, out)."""
    dims = [(5, 8), (8, 4), (4, 12)]
    params = {}
    for i, (fan_in, fan_out) in enumerate(dims, start=1):
        key, kw, kb = jax.random.split(key, 3)
        bound = 1.0 / jnp.sqrt(jnp.float32(fan_in))
        params[f"w{i}"] = jax.random.uniform(
            kw, (fan_in, fan_out), jnp.float32, minval=-bound, maxval=bound)
        params[f"b{i}"] = jax.random.uniform(
            kb, (1, fan_out), jnp.float32, minval=-bound, maxval=bound)
    return params


def reference_forward(x, params):
    h = jnp.maximum(x @ params["w1"] + params["b1"], 0.0)
    h = jnp.maximum(h @ params["w2"] + params["b2"], 0.0)
    h = jnp.maximum(h @ params["w3"] + params["b3"], 0.0)
    return h


if __name__ == "__main__":
    key = jax.random.PRNGKey(0)
    key, kx = jax.random.split(key)
    # SimpleModel.get_input(): torch.rand(4, 5)
    x = jax.random.uniform(kx, (4, 5), jnp.float32)
    params = init_params(key)
    slab = pack_params(params)   # one-time host-side packing (amortized in practice)

    out = simple_model_forward(x, slab)
    jax.block_until_ready(out)

    ref = reference_forward(x, params)
    assert out.shape == (4, 12), out.shape
    assert jnp.allclose(out, ref, atol=1e-5, rtol=1e-5), "mismatch vs reference"
    print("KERNEL_OK")
</pallas_src>

<mosaic_0001>
module attributes {stable_mosaic.version = 11 : i64} {
  func.func @_mlp_kernel(%arg0: memref<8x128xf32, #tpu.memory_space<vmem>>, %arg1: memref<32x128xf32, #tpu.memory_space<vmem>>, %arg2: memref<8x128xf32, #tpu.memory_space<vmem>>) attributes {dimension_semantics = [], scalar_prefetch = 0 : i64, scratch_operands = 0 : i64, tpu.core_type = #tpu.core_type<tc>} {
    %c0 = arith.constant 0 : index
    %c0_0 = arith.constant 0 : index
    %0 = vector.load %arg0[%c0, %c0_0] : memref<8x128xf32, #tpu.memory_space<vmem>>, vector<8x128xf32>
    %c0_1 = arith.constant 0 : index
    %c0_2 = arith.constant 0 : index
    %1 = vector.load %arg1[%c0_1, %c0_2] : memref<32x128xf32, #tpu.memory_space<vmem>>, vector<32x128xf32>
    %2 = vector.extract_strided_slice %1 {offsets = [24, 0], sizes = [1, 128], strides = [1, 1]} : vector<32x128xf32> to vector<1x128xf32>
    %3 = vector.shape_cast %2 : vector<1x128xf32> to vector<1x128xf32>
    %4 = vector.broadcast %3 : vector<1x128xf32> to vector<8x128xf32>
    %5 = vector.extract_strided_slice %0 {offsets = [0, 0], sizes = [8, 1], strides = [1, 1]} : vector<8x128xf32> to vector<8x1xf32>
    %6 = vector.extract_strided_slice %1 {offsets = [0, 0], sizes = [1, 128], strides = [1, 1]} : vector<32x128xf32> to vector<1x128xf32>
    %7 = vector.broadcast %5 : vector<8x1xf32> to vector<8x128xf32>
    %8 = vector.broadcast %6 : vector<1x128xf32> to vector<8x128xf32>
    %9 = arith.mulf %7, %8 : vector<8x128xf32>
    %10 = arith.addf %4, %9 : vector<8x128xf32>
    %11 = vector.extract_strided_slice %0 {offsets = [0, 1], sizes = [8, 1], strides = [1, 1]} : vector<8x128xf32> to vector<8x1xf32>
    %12 = vector.extract_strided_slice %1 {offsets = [1, 0], sizes = [1, 128], strides = [1, 1]} : vector<32x128xf32> to vector<1x128xf32>
    %13 = vector.broadcast %11 : vector<8x1xf32> to vector<8x128xf32>
    %14 = vector.broadcast %12 : vector<1x128xf32> to vector<8x128xf32>
    %15 = arith.mulf %13, %14 : vector<8x128xf32>
    %16 = arith.addf %10, %15 : vector<8x128xf32>
    %17 = vector.extract_strided_slice %0 {offsets = [0, 2], sizes = [8, 1], strides = [1, 1]} : vector<8x128xf32> to vector<8x1xf32>
    %18 = vector.extract_strided_slice %1 {offsets = [2, 0], sizes = [1, 128], strides = [1, 1]} : vector<32x128xf32> to vector<1x128xf32>
    %19 = vector.broadcast %17 : vector<8x1xf32> to vector<8x128xf32>
    %20 = vector.broadcast %18 : vector<1x128xf32> to vector<8x128xf32>
    %21 = arith.mulf %19, %20 : vector<8x128xf32>
    %22 = arith.addf %16, %21 : vector<8x128xf32>
    %23 = vector.extract_strided_slice %0 {offsets = [0, 3], sizes = [8, 1], strides = [1, 1]} : vector<8x128xf32> to vector<8x1xf32>
    %24 = vector.extract_strided_slice %1 {offsets = [3, 0], sizes = [1, 128], strides = [1, 1]} : vector<32x128xf32> to vector<1x128xf32>
    %25 = vector.broadcast %23 : vector<8x1xf32> to vector<8x128xf32>
    %26 = vector.broadcast %24 : vector<1x128xf32> to vector<8x128xf32>
    %27 = arith.mulf %25, %26 : vector<8x128xf32>
    %28 = arith.addf %22, %27 : vector<8x128xf32>
    %29 = vector.extract_strided_slice %0 {offsets = [0, 4], sizes = [8, 1], strides = [1, 1]} : vector<8x128xf32> to vector<8x1xf32>
    %30 = vector.extract_strided_slice %1 {offsets = [4, 0], sizes = [1, 128], strides = [1, 1]} : vector<32x128xf32> to vector<1x128xf32>
    %31 = vector.broadcast %29 : vector<8x1xf32> to vector<8x128xf32>
    %32 = vector.broadcast %30 : vector<1x128xf32> to vector<8x128xf32>
    %33 = arith.mulf %31, %32 : vector<8x128xf32>
    %34 = arith.addf %28, %33 : vector<8x128xf32>
    %cst = arith.constant 0.000000e+00 : f32
    %35 = vector.broadcast %cst : f32 to vector<8x128xf32>
    %36 = arith.maximumf %34, %35 : vector<8x128xf32>
    %37 = vector.extract_strided_slice %1 {offsets = [25, 0], sizes = [1, 128], strides = [1, 1]} : vector<32x128xf32> to vector<1x128xf32>
    %38 = vector.shape_cast %37 : vector<1x128xf32> to vector<1x128xf32>
    %39 = vector.broadcast %38 : vector<1x128xf32> to vector<8x128xf32>
    %40 = vector.extract_strided_slice %36 {offsets = [0, 0], sizes = [8, 1], strides = [1, 1]} : vector<8x128xf32> to vector<8x1xf32>
    %41 = vector.extract_strided_slice %1 {offsets = [8, 0], sizes = [1, 128], strides = [1, 1]} : vector<32x128xf32> to vector<1x128xf32>
    %42 = vector.broadcast %40 : vector<8x1xf32> to vector<8x128xf32>
    %43 = vector.broadcast %41 : vector<1x128xf32> to vector<8x128xf32>
    %44 = arith.mulf %42, %43 : vector<8x128xf32>
    %45 = arith.addf %39, %44 : vector<8x128xf32>
    %46 = vector.extract_strided_slice %36 {offsets = [0, 1], sizes = [8, 1], strides = [1, 1]} : vector<8x128xf32> to vector<8x1xf32>
    %47 = vector.extract_strided_slice %1 {offsets = [9, 0], sizes = [1, 128], strides = [1, 1]} : vector<32x128xf32> to vector<1x128xf32>
    %48 = vector.broadcast %46 : vector<8x1xf32> to vector<8x128xf32>
    %49 = vector.broadcast %47 : vector<1x128xf32> to vector<8x128xf32>
    %50 = arith.mulf %48, %49 : vector<8x128xf32>
    %51 = arith.addf %45, %50 : vector<8x128xf32>
    %52 = vector.extract_strided_slice %36 {offsets = [0, 2], sizes = [8, 1], strides = [1, 1]} : vector<8x128xf32> to vector<8x1xf32>
    %53 = vector.extract_strided_slice %1 {offsets = [10, 0], sizes = [1, 128], strides = [1, 1]} : vector<32x128xf32> to vector<1x128xf32>
    %54 = vector.broadcast %52 : vector<8x1xf32> to vector<8x128xf32>
    %55 = vector.broadcast %53 : vector<1x128xf32> to vector<8x128xf32>
    %56 = arith.mulf %54, %55 : vector<8x128xf32>
    %57 = arith.addf %51, %56 : vector<8x128xf32>
    %58 = vector.extract_strided_slice %36 {offsets = [0, 3], sizes = [8, 1], strides = [1, 1]} : vector<8x128xf32> to vector<8x1xf32>
    %59 = vector.extract_strided_slice %1 {offsets = [11, 0], sizes = [1, 128], strides = [1, 1]} : vector<32x128xf32> to vector<1x128xf32>
    %60 = vector.broadcast %58 : vector<8x1xf32> to vector<8x128xf32>
    %61 = vector.broadcast %59 : vector<1x128xf32> to vector<8x128xf32>
    %62 = arith.mulf %60, %61 : vector<8x128xf32>
    %63 = arith.addf %57, %62 : vector<8x128xf32>
    %64 = vector.extract_strided_slice %36 {offsets = [0, 4], sizes = [8, 1], strides = [1, 1]} : vector<8x128xf32> to vector<8x1xf32>
    %65 = vector.extract_strided_slice %1 {offsets = [12, 0], sizes = [1, 128], strides = [1, 1]} : vector<32x128xf32> to vector<1x128xf32>
    %66 = vector.broadcast %64 : vector<8x1xf32> to vector<8x128xf32>
    %67 = vector.broadcast %65 : vector<1x128xf32> to vector<8x128xf32>
    %68 = arith.mulf %66, %67 : vector<8x128xf32>
    %69 = arith.addf %63, %68 : vector<8x128xf32>
    %70 = vector.extract_strided_slice %36 {offsets = [0, 5], sizes = [8, 1], strides = [1, 1]} : vector<8x128xf32> to vector<8x1xf32>
    %71 = vector.extract_strided_slice %1 {offsets = [13, 0], sizes = [1, 128], strides = [1, 1]} : vector<32x128xf32> to vector<1x128xf32>
    %72 = vector.broadcast %70 : vector<8x1xf32> to vector<8x128xf32>
    %73 = vector.broadcast %71 : vector<1x128xf32> to vector<8x128xf32>
    %74 = arith.mulf %72, %73 : vector<8x128xf32>
    %75 = arith.addf %69, %74 : vector<8x128xf32>
    %76 = vector.extract_strided_slice %36 {offsets = [0, 6], sizes = [8, 1], strides = [1, 1]} : vector<8x128xf32> to vector<8x1xf32>
    %77 = vector.extract_strided_slice %1 {offsets = [14, 0], sizes = [1, 128], strides = [1, 1]} : vector<32x128xf32> to vector<1x128xf32>
    %78 = vector.broadcast %76 : vector<8x1xf32> to vector<8x128xf32>
    %79 = vector.broadcast %77 : vector<1x128xf32> to vector<8x128xf32>
    %80 = arith.mulf %78, %79 : vector<8x128xf32>
    %81 = arith.addf %75, %80 : vector<8x128xf32>
    %82 = vector.extract_strided_slice %36 {offsets = [0, 7], sizes = [8, 1], strides = [1, 1]} : vector<8x128xf32> to vector<8x1xf32>
    %83 = vector.extract_strided_slice %1 {offsets = [15, 0], sizes = [1, 128], strides = [1, 1]} : vector<32x128xf32> to vector<1x128xf32>
    %84 = vector.broadcast %82 : vector<8x1xf32> to vector<8x128xf32>
    %85 = vector.broadcast %83 : vector<1x128xf32> to vector<8x128xf32>
    %86 = arith.mulf %84, %85 : vector<8x128xf32>
    %87 = arith.addf %81, %86 : vector<8x128xf32>
    %cst_3 = arith.constant 0.000000e+00 : f32
    %88 = vector.broadcast %cst_3 : f32 to vector<8x128xf32>
    %89 = arith.maximumf %87, %88 : vector<8x128xf32>
    %90 = vector.extract_strided_slice %1 {offsets = [26, 0], sizes = [1, 128], strides = [1, 1]} : vector<32x128xf32> to vector<1x128xf32>
    %91 = vector.shape_cast %90 : vector<1x128xf32> to vector<1x128xf32>
    %92 = vector.broadcast %91 : vector<1x128xf32> to vector<8x128xf32>
    %93 = vector.extract_strided_slice %89 {offsets = [0, 0], sizes = [8, 1], strides = [1, 1]} : vector<8x128xf32> to vector<8x1xf32>
    %94 = vector.extract_strided_slice %1 {offsets = [16, 0], sizes = [1, 128], strides = [1, 1]} : vector<32x128xf32> to vector<1x128xf32>
    %95 = vector.broadcast %93 : vector<8x1xf32> to vector<8x128xf32>
    %96 = vector.broadcast %94 : vector<1x128xf32> to vector<8x128xf32>
    %97 = arith.mulf %95, %96 : vector<8x128xf32>
    %98 = arith.addf %92, %97 : vector<8x128xf32>
    %99 = vector.extract_strided_slice %89 {offsets = [0, 1], sizes = [8, 1], strides = [1, 1]} : vector<8x128xf32> to vector<8x1xf32>
    %100 = vector.extract_strided_slice %1 {offsets = [17, 0], sizes = [1, 128], strides = [1, 1]} : vector<32x128xf32> to vector<1x128xf32>
    %101 = vector.broadcast %99 : vector<8x1xf32> to vector<8x128xf32>
    %102 = vector.broadcast %100 : vector<1x128xf32> to vector<8x128xf32>
    %103 = arith.mulf %101, %102 : vector<8x128xf32>
    %104 = arith.addf %98, %103 : vector<8x128xf32>
    %105 = vector.extract_strided_slice %89 {offsets = [0, 2], sizes = [8, 1], strides = [1, 1]} : vector<8x128xf32> to vector<8x1xf32>
    %106 = vector.extract_strided_slice %1 {offsets = [18, 0], sizes = [1, 128], strides = [1, 1]} : vector<32x128xf32> to vector<1x128xf32>
    %107 = vector.broadcast %105 : vector<8x1xf32> to vector<8x128xf32>
    %108 = vector.broadcast %106 : vector<1x128xf32> to vector<8x128xf32>
    %109 = arith.mulf %107, %108 : vector<8x128xf32>
    %110 = arith.addf %104, %109 : vector<8x128xf32>
    %111 = vector.extract_strided_slice %89 {offsets = [0, 3], sizes = [8, 1], strides = [1, 1]} : vector<8x128xf32> to vector<8x1xf32>
    %112 = vector.extract_strided_slice %1 {offsets = [19, 0], sizes = [1, 128], strides = [1, 1]} : vector<32x128xf32> to vector<1x128xf32>
    %113 = vector.broadcast %111 : vector<8x1xf32> to vector<8x128xf32>
    %114 = vector.broadcast %112 : vector<1x128xf32> to vector<8x128xf32>
    %115 = arith.mulf %113, %114 : vector<8x128xf32>
    %116 = arith.addf %110, %115 : vector<8x128xf32>
    %cst_4 = arith.constant 0.000000e+00 : f32
    %117 = vector.broadcast %cst_4 : f32 to vector<8x128xf32>
    %118 = arith.maximumf %116, %117 : vector<8x128xf32>
    %c0_5 = arith.constant 0 : index
    %c0_6 = arith.constant 0 : index
    %119 = vector.load %arg2[%c0_5, %c0_6] : memref<8x128xf32, #tpu.memory_space<vmem>>, vector<8x128xf32>
    tpu.vector_store %arg2[%c0_5, %c0_6], %118 {strides = array<i32>} : memref<8x128xf32, #tpu.memory_space<vmem>>, vector<8x128xf32>,
    return
  }
}

</mosaic_0001>

<bundles_post_ra>
// kernel: tpu_custom_call.1
= control target key start
LH: loop header
LB: loop body
LE: loop exit
PB: predicated region body
PF: predicated region fallthrough
CT: control target
= control target key end

     0   :  { %7 = vsyncpa [#allocation3], 0  ;;  %s349_s0 = inlined_call_operand.hbm [shape: f32[8,128], index: 0, kind: input, shape index: {}]   ;;  %s350_s1 = inlined_call_operand.hbm [shape: f32[32,128], index: 1, kind: input, shape index: {}]   ;;  %s351_s2 = inlined_call_operand.hbm [shape: f32[8,128], index: 2, kind: output, shape index: {}]  }
   0x1   :  { %8 = vsyncpa [#allocation6], 0 }
   0x2   :  { %9 = vsyncpa [#allocation4], 0  ;;  %s15_s11 = sshll.u32 %s349_s0, 4  ;;  %s303_s12 = smov [#allocation2]   ;;  %s16_s11 = int_to_ptr.hbm [resolvable:$true] %s15_s11 }
   0x3   :  { %s17_s13 = sshll.u32 %s303_s12, 4  ;;  %s25_s16 = sshll.u32 %s350_s1, 4  ;;  %s18_s13 = int_to_ptr.vmem [resolvable:$true] %s17_s13  ;;  %s26_s16 = int_to_ptr.hbm [resolvable:$true] %s25_s16 }
   0x4   :  { %20 = dma.hbm_to_vmem [thread:$0]  %s16_s11, 128, %s18_s13, [#allocation3]  }
   0x5   :  { %s304_s17 = smov [#allocation5]   ;;  %s305_s19 = smov 128  }
   0x6   :  { %s27_s18 = sshll.u32 %s304_s17, 4  ;;  %s306_s20 = smov 8   ;;  %s28_s18 = int_to_ptr.vmem [resolvable:$true] %s27_s18 }
   0x7   :  { %33 = dma.hbm_to_vmem [thread:$0]  %s26_s16, 512, %s28_s18, [#allocation6], %s305_s19, %s305_s19, %s306_s20  }
   0x8   :  { %297 = dma.done.wait [#allocation3], 128  }
   0x9   :  { %298 = vsyncadd [#allocation3], 4294967168 }
   0xa   :  { %299 = dma.done.wait [#allocation6], 512  }
   0xb   :  { %300 = vsyncadd [#allocation6], 4294966784  ;;  %v307_v0 = vmov 0   ;;  %v308_v1 = vmov 2   ;;  %v309_v2 = vmov 4   ;;  %v42_v3 = vld [vmem:[#allocation2] sm:$0xff] }
   0xc   :  { %207 = vset.pattern.permute.xlu0 %v307_v0  ;;  %209 = vset.pattern.permute.xlu1 %v308_v1  ;;  %v310_v4 = vmov 1   ;;  %v311_v5 = vmov 3   ;;  %v43_v6 = vld [vmem:[#allocation5] sm:$0xff]  ;;  %v339_v10 = vld [vmem:[#allocation5 + $0x18] sm:$0xff]  ;;  %v312_v30 = vmov 6   ;;  %v313_v31 = vmov 5  }
   0xd   :  { %211 = vset.pattern.permute.xlu2 %v309_v2  ;;  %50 = vperm.xlu0 %207, %v42_v3   ;;  %v53_v9 = vperm.slane %v43_v6, 0  ;;  %v47_v11 = vperm.slane %v339_v10, 0  ;;  %v60_v13 = vperm.slane %v43_v6, 1  ;;  %v67_v14 = vperm.slane %v43_v6, 2  ;;  %v44_v34 = vld [vmem:[#allocation5 + $0x8] sm:$0xff]  ;;  %s315_s0 = smov [#allocation7]  }
   0xe   :  { %64 = vperm.xlu1 %209, %v42_v3   ;;  %78 = vperm.xlu2 %211, %v42_v3   ;;  %v74_v15 = vperm.slane %v43_v6, 3  ;;  %v81_v20 = vperm.slane %v43_v6, 4  ;;  %v314_v32 = vmov 7   ;;  %v91_v35 = vperm.slane %v44_v34, 0  ;;  %s181_s1 = sshll.u32 %s315_s0, 4  ;;  %s183_s23 = sshll.u32 %s351_s2, 4  ;;  %s182_s1 = int_to_ptr.vmem [resolvable:$true] %s181_s1  ;;  %s184_s23 = int_to_ptr.hbm [resolvable:$true] %s183_s23 }
   0xf   :  { %v98_v36 = vperm.slane %v44_v34, 1  ;;  %v85_v38 = vperm.slane %v339_v10, 1  ;;  %v105_v43 = vperm.slane %v44_v34, 2  ;;  %v112_v46 = vperm.slane %v44_v34, 3 }
  0x10   :  { %v119_v47 = vperm.slane %v44_v34, 4  ;;  %v126_v54 = vperm.slane %v44_v34, 5  ;;  %v133_v57 = vperm.slane %v44_v34, 6  ;;  %v140_v59 = vperm.slane %v44_v34, 7 }
  0x15   :  { %208 = vset.pattern.permute.xlu0 %v310_v4 }
  0x16   :  { %210 = vset.pattern.permute.xlu1 %v311_v5  ;;  %57 = vperm.xlu0 %208, %v42_v3  }
  0x17   :  { %71 = vperm.xlu1 %210, %v42_v3   ;;  %212 = vset.pattern.permute.xlu2 %v307_v0 }
  0x1e   :  { %215 = vset.pattern.permute.xlu0 %v311_v5 }
  0x1f   :  { %213 = vset.pattern.permute.xlu1 %v310_v4 }
  0x68   :  { %v79_v21 = vpop.permute.xlu2 %78 }
  0x69   :  { %v82_v26 = vmul.f32 %v81_v20, %v79_v21 }
  0x7f   :  { %v51_v7 = vpop.permute.xlu0 %50 }
  0x80   :  { %v65_v8 = vpop.permute.xlu1 %64  ;;  %v54_v12 = vmul.f32 %v53_v9, %v51_v7  ;;  %v144_v9 = vperm.slane %v339_v10, 2 }
  0x81   :  { %v68_v22 = vmul.f32 %v67_v14, %v65_v8 }
  0x82   :  { %v55_v18 = vadd.f32 %v54_v12, %v47_v11 }
  0x88   :  { %v58_v16 = vpop.permute.xlu0 %57 }
  0x89   :  { %v72_v17 = vpop.permute.xlu1 %71  ;;  %v61_v19 = vmul.f32 %v60_v13, %v58_v16 }
  0x8a   :  { %v75_v24 = vmul.f32 %v74_v15, %v72_v17 }
  0x8b   :  { %v62_v23 = vadd.f32 %v61_v19, %v55_v18 }
  0x8d   :  { %v69_v25 = vadd.f32 %v68_v22, %v62_v23 }
  0x8f   :  { %v76_v27 = vadd.f32 %v75_v24, %v69_v25 }
  0x91   :  { %v83_v28 = vadd.f32 %v82_v26, %v76_v27 }
  0x93   :  { %v84_v29 = vmax.f32 %v83_v28, 0.0 }
  0x95   :  { %109 = vperm.xlu0 %215, %v84_v29   ;;  %95 = vperm.xlu1 %213, %v84_v29  }
  0x96   :  { %88 = vperm.xlu2 %212, %v84_v29  }
  0x9d   :  { %216 = vset.pattern.permute.xlu1 %v309_v2  ;;  %220 = vset.pattern.permute.xlu0 %v307_v0 }
  0x9e   :  { %214 = vset.pattern.permute.xlu2 %v308_v1  ;;  %116 = vperm.xlu1 %216, %v84_v29  }
  0x9f   :  { %102 = vperm.xlu2 %214, %v84_v29  }
  0xa6   :  { %218 = vset.pattern.permute.xlu1 %v312_v30 }
  0xa7   :  { %217 = vset.pattern.permute.xlu2 %v313_v31  ;;  %130 = vperm.xlu1 %218, %v84_v29  }
  0xa8   :  { %123 = vperm.xlu2 %217, %v84_v29  }
  0xaf   :  { %221 = vset.pattern.permute.xlu1 %v310_v4  ;;  %v45_v4 = vld [vmem:[#allocation5 + $0x10] sm:$0xff] }
  0xb0   :  { %219 = vset.pattern.permute.xlu2 %v314_v32  ;;  %v150_v6 = vperm.slane %v45_v4, 0  ;;  %v157_v7 = vperm.slane %v45_v4, 1  ;;  %v164_v13 = vperm.slane %v45_v4, 2  ;;  %v171_v18 = vperm.slane %v45_v4, 3 }
  0xb1   :  { %137 = vperm.xlu2 %219, %v84_v29  }
  0xb9   :  { %222 = vset.pattern.permute.xlu2 %v308_v1 }
  0xf0   :  { %v89_v33 = vpop.permute.xlu2 %88 }
  0xf1   :  { %v92_v39 = vmul.f32 %v91_v35, %v89_v33 }
  0xf3   :  { %v93_v42 = vadd.f32 %v92_v39, %v85_v38 }
  0xf9   :  { %v103_v37 = vpop.permute.xlu2 %102 }
  0xfa   :  { %v106_v45 = vmul.f32 %v105_v43, %v103_v37 }
 0x102   :  { %v124_v48 = vpop.permute.xlu2 %123 }
 0x103   :  { %v127_v58 = vmul.f32 %v126_v54, %v124_v48 }
 0x107   :  { %v96_v40 = vpop.permute.xlu1 %95  ;;  %v110_v49 = vpop.permute.xlu0 %109 }
 0x108   :  { %v99_v41 = vmul.f32 %v98_v36, %v96_v40  ;;  %v113_v52 = vmul.f32 %v112_v46, %v110_v49 }
 0x10a   :  { %v100_v44 = vadd.f32 %v99_v41, %v93_v42 }
 0x10b   :  { %v138_v60 = vpop.permute.xlu2 %137 }
 0x10c   :  { %v107_v50 = vadd.f32 %v106_v45, %v100_v44  ;;  %v141_v0 = vmul.f32 %v140_v59, %v138_v60 }
 0x10e   :  { %v114_v55 = vadd.f32 %v113_v52, %v107_v50 }
 0x110   :  { %v117_v51 = vpop.permute.xlu1 %116 }
 0x111   :  { %v120_v53 = vmul.f32 %v119_v47, %v117_v51 }
 0x113   :  { %v121_v56 = vadd.f32 %v120_v53, %v114_v55 }
 0x115   :  { %v128_v62 = vadd.f32 %v127_v58, %v121_v56 }
 0x119   :  { %v131_v61 = vpop.permute.xlu1 %130 }
 0x11a   :  { %v134_v63 = vmul.f32 %v133_v57, %v131_v61 }
 0x11c   :  { %v135_v1 = vadd.f32 %v134_v63, %v128_v62 }
 0x11e   :  { %v142_v2 = vadd.f32 %v141_v0, %v135_v1 }
 0x120   :  { %v143_v3 = vmax.f32 %v142_v2, 0.0 }
 0x122   :  { %161 = vperm.xlu2 %222, %v143_v3   ;;  %154 = vperm.xlu1 %221, %v143_v3  }
 0x123   :  { %147 = vperm.xlu0 %220, %v143_v3  }
 0x12a   :  { %223 = vset.pattern.permute.xlu1 %v311_v5 }
 0x12b   :  { %168 = vperm.xlu1 %223, %v143_v3   ;;  %224 = vset.pattern.permute.xlu0 %v311_v5 }
 0x17c   :  { %v162_v16 = vpop.permute.xlu2 %161 }
 0x17d   :  { %v165_v19 = vmul.f32 %v164_v13, %v162_v16 }
 0x194   :  { %v155_v8 = vpop.permute.xlu1 %154 }
 0x195   :  { %v148_v11 = vpop.permute.xlu0 %147  ;;  %v158_v14 = vmul.f32 %v157_v7, %v155_v8 }
 0x196   :  { %v151_v12 = vmul.f32 %v150_v6, %v148_v11 }
 0x198   :  { %v152_v15 = vadd.f32 %v151_v12, %v144_v9 }
 0x19a   :  { %v159_v17 = vadd.f32 %v158_v14, %v152_v15 }
 0x19c   :  { %v166_v21 = vadd.f32 %v165_v19, %v159_v17 }
 0x19d   :  { %v169_v20 = vpop.permute.xlu1 %168 }
 0x19e   :  { %v172_v22 = vmul.f32 %v171_v18, %v169_v20 }
 0x1a0   :  { %v173_v5 = vadd.f32 %v172_v22, %v166_v21 }
 0x1a2   :  { %v174_v10 = vmax.f32 %v173_v5, 0.0 }
 0x1a4   :  { %175 = vst [vmem:[#allocation7] sm:$0xff] %v174_v10 }
 0x1a5   :  { %186 = dma.vmem_to_hbm [thread:$0]  %s182_s1, 128, %s184_s23, [#allocation4]  }
 0x1a6   :  { %301 = dma.done.wait [#allocation4], 128  }
 0x1a7   :  { %302 = vsyncadd [#allocation4], 4294967168 }
 0x1a8   :  { %191 = vsyncpa [#allocation3], 1 }
 0x1a9   :  { %192 = vsyncpa [#allocation6], 1 }
 0x1aa   :  { %193 = vsyncpa [#allocation4], 1 }

</bundles_post_ra>
